<compile_context>
chip_gen: v7x
topology: tpu7x:2x2x1
jax: 0.10.0
libtpu: 0.0.40
codegen_flags: <defaults>
</compile_context>

<pallas_src>
import jax
import jax.numpy as jnp
from jax import lax
from jax.experimental import pallas as pl
from jax.experimental.pallas import tpu as pltpu

# ---------------- model dims (small, consistent with the module's forward) ----------------
B = 2          # batch
S = 8          # sequence length
H = 32         # hidden_size (stand-in for 768)
NH = 2         # attention heads
HD = H // NH   # head dim
FFN = 64       # intermediate size
VOCAB = 100
NUM_CLASSES = 6
LANE = 128     # lane-dense width
OUT_ROWS = 8   # output padded to a full sublane tile

# ---- packed weight slab layout (rows = H, every block starts at a 128-lane boundary) ----
W_QKV_OFF = 0          # (H, 3H), Q columns pre-scaled by 1/sqrt(HD)
W_O_OFF = 128          # (H, H)
W_FFN1_OFF = 256       # (H, FFN)
W_FFN2A_OFF = 384      # (H, H)  rows 0:H   of original (FFN, H) w_ffn2
W_FFN2B_OFF = 512      # (H, H)  rows H:FFN of original w_ffn2
W_POOL_OFF = 640       # (H, H)
W_CLS_OFF = 768        # (H, LANE) classifier weight padded to 128 lanes
W_SLAB_LANES = 896

# ---- bias / LN-param slab layout: (12, 128) f32, one vector per row ----
R_B_QKV, R_B_O, R_B_FFN1, R_B_FFN2, R_B_POOL, R_B_CLS = 0, 1, 2, 3, 4, 5
R_EMB_G, R_EMB_B, R_ATT_G, R_ATT_B, R_FFN_G, R_FFN_B = 6, 7, 8, 9, 10, 11
B_SLAB_ROWS = 12

VMEM_SPEC = pl.BlockSpec(memory_space=pltpu.MemorySpace.VMEM)


# ---------------------------------- in-kernel helpers ----------------------------------
def _layernorm(x, g, b):
    mean = jnp.mean(x, axis=-1, keepdims=True)
    var = jnp.mean((x - mean) ** 2, axis=-1, keepdims=True)
    return (x - mean) * lax.rsqrt(var + 1e-12) * g + b


def _gelu(x):
    return 0.5 * x * (1.0 + jnp.tanh(0.7978845608028654 * (x + 0.044715 * x * x * x)))


# ---------------------------------- fused encoder kernel ----------------------------------
def _encoder_kernel(emb_ref, mask_ref, w_ref, b_ref, out_ref):
    # ---- static slices of the packed slabs (128-lane-aligned starts, zero-cost ref views) ----
    w_qkv = w_ref[:, W_QKV_OFF:W_QKV_OFF + 3 * H]
    wo = w_ref[:, W_O_OFF:W_O_OFF + H]
    w_ffn1 = w_ref[:, W_FFN1_OFF:W_FFN1_OFF + FFN]
    w_ffn2a = w_ref[:, W_FFN2A_OFF:W_FFN2A_OFF + H]
    w_ffn2b = w_ref[:, W_FFN2B_OFF:W_FFN2B_OFF + H]
    pool_w = w_ref[:, W_POOL_OFF:W_POOL_OFF + H]
    cls_w = w_ref[:, W_CLS_OFF:W_CLS_OFF + LANE]

    b_qkv = b_ref[R_B_QKV:R_B_QKV + 1, 0:3 * H]
    bo = b_ref[R_B_O:R_B_O + 1, 0:H]
    b_ffn1 = b_ref[R_B_FFN1:R_B_FFN1 + 1, 0:FFN]
    b_ffn2 = b_ref[R_B_FFN2:R_B_FFN2 + 1, 0:H]
    pool_b = b_ref[R_B_POOL:R_B_POOL + 1, 0:H]
    cls_b = b_ref[R_B_CLS:R_B_CLS + 1, 0:LANE]
    emb_g = b_ref[R_EMB_G:R_EMB_G + 1, 0:H]
    emb_b = b_ref[R_EMB_B:R_EMB_B + 1, 0:H]
    att_g = b_ref[R_ATT_G:R_ATT_G + 1, 0:H]
    att_b = b_ref[R_ATT_B:R_ATT_B + 1, 0:H]
    ffn_g = b_ref[R_FFN_G:R_FFN_G + 1, 0:H]
    ffn_b = b_ref[R_FFN_B:R_FFN_B + 1, 0:H]

    # ---- embedding layernorm (f32) ----
    x = _layernorm(emb_ref[...], emb_g, emb_b)                                 # (BS, H) f32
    x_bf = x.astype(jnp.bfloat16)

    # ---- fused Q/K/V projection: one MXU push over N = 3H (bf16 operands, f32 acc) ----
    qkv = jnp.dot(x_bf, w_qkv, preferred_element_type=jnp.float32) + b_qkv     # (BS, 3H)

    mask = mask_ref[...]                                                       # (BS, BS) additive

    # ---- batch-merged attention; split-K accumulation into the output projection ----
    attn_out = jnp.zeros((B * S, H), jnp.float32)
    for h in range(NH):
        c0 = h * HD
        q = qkv[:, c0:c0 + HD].astype(jnp.bfloat16)                            # (BS, HD)
        k = qkv[:, H + c0:H + c0 + HD].astype(jnp.bfloat16)
        v = qkv[:, 2 * H + c0:2 * H + c0 + HD].astype(jnp.bfloat16)
        # scale is folded into the Q columns of w_qkv; mask added BEFORE the row-max
        scores = lax.dot_general(q, k, (((1,), (1,)), ((), ())),
                                 preferred_element_type=jnp.float32) + mask    # (BS, BS)
        m = jnp.max(scores, axis=-1, keepdims=True)
        e = jnp.exp(scores - m)
        p = e * pl.reciprocal(jnp.sum(e, axis=-1, keepdims=True), approx=True)
        ctx_h = jnp.dot(p.astype(jnp.bfloat16), v,
                        preferred_element_type=jnp.float32)                    # (BS, HD)
        attn_out = attn_out + jnp.dot(ctx_h.astype(jnp.bfloat16), wo[c0:c0 + HD, :],
                                      preferred_element_type=jnp.float32)
    attn_out = attn_out + bo

    # ---- residual + LN ----
    x2 = _layernorm(x + attn_out, att_g, att_b)
    x2_bf = x2.astype(jnp.bfloat16)

    # ---- feed-forward (FFN2 split-K over the two packed 32-row halves) + residual + LN ----
    h1 = _gelu(jnp.dot(x2_bf, w_ffn1, preferred_element_type=jnp.float32) + b_ffn1)  # (BS, FFN)
    h1_bf = h1.astype(jnp.bfloat16)
    ffn_out = (jnp.dot(h1_bf[:, 0:H], w_ffn2a, preferred_element_type=jnp.float32)
               + jnp.dot(h1_bf[:, H:FFN], w_ffn2b, preferred_element_type=jnp.float32)
               + b_ffn2)
    x3 = _layernorm(x2 + ffn_out, ffn_g, ffn_b)                                # (BS, H)

    # ---- CLS selection via constant one-hot matmul (no sublane slice / concat) ----
    row = lax.broadcasted_iota(jnp.int32, (OUT_ROWS, B * S), 0)
    col = lax.broadcasted_iota(jnp.int32, (OUT_ROWS, B * S), 1)
    tgt = jnp.where(row < B, row * S, 0)                                       # pad rows -> batch 0
    sel = (col == tgt).astype(jnp.bfloat16)                                    # (8, BS)
    cls_tok = jnp.dot(sel, x3.astype(jnp.bfloat16),
                      preferred_element_type=jnp.float32)                      # (8, H)

    # ---- pooler (tanh) ----
    pooled = jnp.tanh(jnp.dot(cls_tok.astype(jnp.bfloat16), pool_w,
                              preferred_element_type=jnp.float32) + pool_b)    # (8, H)

    # ---- dropout (identity at inference) + classifier, unmasked (8, 128) store ----
    out_ref[...] = (jnp.dot(pooled.astype(jnp.bfloat16), cls_w,
                            preferred_element_type=jnp.float32)
                    + cls_b).astype(out_ref.dtype)


# ---------------------------------- parameters ----------------------------------
def init_params(seed=0):
    key = jax.random.PRNGKey(seed)
    ks = jax.random.split(key, 16)
    std = 0.02
    scale = 1.0 / (HD ** 0.5)

    wq = jax.random.normal(ks[3], (H, H), jnp.float32) * std
    wk = jax.random.normal(ks[4], (H, H), jnp.float32) * std
    wv = jax.random.normal(ks[5], (H, H), jnp.float32) * std
    wo = jax.random.normal(ks[6], (H, H), jnp.float32) * std
    w_ffn1 = jax.random.normal(ks[7], (H, FFN), jnp.float32) * std
    w_ffn2 = jax.random.normal(ks[8], (FFN, H), jnp.float32) * std
    pooler_w = jax.random.normal(ks[9], (H, H), jnp.float32) * std
    cls_w = jax.random.normal(ks[10], (H, NUM_CLASSES), jnp.float32) * std

    # fused QKV with the 1/sqrt(HD) softmax scale folded into the Q columns
    w_qkv = jnp.concatenate([wq * scale, wk, wv], axis=1)                      # (H, 3H)
    cls_w_pad = jnp.zeros((H, LANE), jnp.float32).at[:, :NUM_CLASSES].set(cls_w)

    # ---- packed weight slab (bf16 for native MXU); every block 128-lane aligned ----
    w_slab = jnp.zeros((H, W_SLAB_LANES), jnp.float32)
    w_slab = w_slab.at[:, W_QKV_OFF:W_QKV_OFF + 3 * H].set(w_qkv)
    w_slab = w_slab.at[:, W_O_OFF:W_O_OFF + H].set(wo)
    w_slab = w_slab.at[:, W_FFN1_OFF:W_FFN1_OFF + FFN].set(w_ffn1)
    w_slab = w_slab.at[:, W_FFN2A_OFF:W_FFN2A_OFF + H].set(w_ffn2[:H, :])
    w_slab = w_slab.at[:, W_FFN2B_OFF:W_FFN2B_OFF + H].set(w_ffn2[H:, :])
    w_slab = w_slab.at[:, W_POOL_OFF:W_POOL_OFF + H].set(pooler_w)
    w_slab = w_slab.at[:, W_CLS_OFF:W_CLS_OFF + LANE].set(cls_w_pad)
    w_slab = w_slab.astype(jnp.bfloat16)

    # ---- bias / LN-param slab (f32): biases zero, LN gamma = 1, LN beta = 0 ----
    b_slab = jnp.zeros((B_SLAB_ROWS, LANE), jnp.float32)
    b_slab = b_slab.at[R_EMB_G, :H].set(1.0)
    b_slab = b_slab.at[R_ATT_G, :H].set(1.0)
    b_slab = b_slab.at[R_FFN_G, :H].set(1.0)

    return {
        "word_emb": jax.random.normal(ks[0], (VOCAB, H), jnp.float32) * std,
        "pos_emb": jax.random.normal(ks[1], (S, H), jnp.float32) * std,
        "type_emb": jax.random.normal(ks[2], (2, H), jnp.float32) * std,
        "w_slab": w_slab,
        "b_slab": b_slab,
    }


# ---------------------------------- forward ----------------------------------
_COST = pl.CostEstimate(
    flops=390_000,              # qkv + 2x(scores, pV, split-K wo) + ffn1 + ffn2 + sel + pool + cls
    transcendentals=2_000,      # softmax exp + gelu/pooler tanh + LN rsqrt
    bytes_accessed=(B * S * H * 4) + (B * S * B * S * 4)
    + (H * W_SLAB_LANES * 2) + (B_SLAB_ROWS * LANE * 4) + (OUT_ROWS * LANE * 4),
)


@jax.jit
def bert_classifier_forward(params, token_ids, valid_length, segment_ids):
    # attention mask (matches the PyTorch gen_attention_mask loop) combined with a
    # block-diagonal cross-batch mask so attention can run batch-merged in the kernel.
    pos = lax.broadcasted_iota(jnp.int32, (B, S), 1)
    key_valid = (pos < valid_length[:, None]).reshape(B * S)                   # (BS,)
    gid = jnp.arange(B * S)
    same_batch = (gid[:, None] // S) == (gid[None, :] // S)                    # (BS, BS)
    attn_mask = jnp.where(same_batch & key_valid[None, :], 0.0, -1e9).astype(jnp.float32)

    # embedding gather stays in XLA (tiny); everything downstream is one fused Pallas kernel
    emb = (params["word_emb"][token_ids]
           + params["pos_emb"][None, :, :]
           + params["type_emb"][segment_ids]).reshape(B * S, H)

    logits_padded = pl.pallas_call(
        _encoder_kernel,
        out_shape=jax.ShapeDtypeStruct((OUT_ROWS, LANE), jnp.float32),
        in_specs=[VMEM_SPEC] * 4,
        out_specs=VMEM_SPEC,
        cost_estimate=_COST,
    )(emb, attn_mask, params["w_slab"], params["b_slab"])

    return logits_padded[:B, :NUM_CLASSES]                                     # (B, 6)


# ---------------------------------- main ----------------------------------
if __name__ == "__main__":
    key = jax.random.PRNGKey(0)
    k1, k2 = jax.random.split(key)
    token_ids = jax.random.randint(k1, (B, S), 0, VOCAB, dtype=jnp.int32)
    segment_ids = jax.random.randint(k2, (B, S), 0, 2, dtype=jnp.int32)
    valid_length = jnp.array([5, 8], dtype=jnp.int32)

    params = init_params(seed=0)

    logits = bert_classifier_forward(params, token_ids, valid_length, segment_ids)
    jax.block_until_ready(logits)
    assert logits.shape == (B, NUM_CLASSES)
    print("KERNEL_OK")
</pallas_src>

<mosaic_0001>
module attributes {stable_mosaic.version = 11 : i64} {
  func.func @_encoder_kernel(%arg0: memref<16x32xf32, #tpu.memory_space<vmem>>, %arg1: memref<16x16xf32, #tpu.memory_space<vmem>>, %arg2: memref<32x896xbf16, #tpu.memory_space<vmem>>, %arg3: memref<12x128xf32, #tpu.memory_space<vmem>>, %arg4: memref<8x128xf32, #tpu.memory_space<vmem>>) attributes {dimension_semantics = [], scalar_prefetch = 0 : i64, scratch_operands = 0 : i64, tpu.core_type = #tpu.core_type<tc>} {
    %c0 = arith.constant 0 : index
    %c0_0 = arith.constant 0 : index
    %0 = vector.load %arg2[%c0, %c0_0] : memref<32x896xbf16, #tpu.memory_space<vmem>>, vector<32x96xbf16>
    %c0_1 = arith.constant 0 : index
    %c128 = arith.constant 128 : index
    %1 = vector.load %arg2[%c0_1, %c128] : memref<32x896xbf16, #tpu.memory_space<vmem>>, vector<32x32xbf16>
    %c0_2 = arith.constant 0 : index
    %c256 = arith.constant 256 : index
    %2 = vector.load %arg2[%c0_2, %c256] : memref<32x896xbf16, #tpu.memory_space<vmem>>, vector<32x64xbf16>
    %c0_3 = arith.constant 0 : index
    %c384 = arith.constant 384 : index
    %3 = vector.load %arg2[%c0_3, %c384] : memref<32x896xbf16, #tpu.memory_space<vmem>>, vector<32x32xbf16>
    %c0_4 = arith.constant 0 : index
    %c512 = arith.constant 512 : index
    %4 = vector.load %arg2[%c0_4, %c512] : memref<32x896xbf16, #tpu.memory_space<vmem>>, vector<32x32xbf16>
    %c0_5 = arith.constant 0 : index
    %c640 = arith.constant 640 : index
    %5 = vector.load %arg2[%c0_5, %c640] : memref<32x896xbf16, #tpu.memory_space<vmem>>, vector<32x32xbf16>
    %c0_6 = arith.constant 0 : index
    %c768 = arith.constant 768 : index
    %6 = vector.load %arg2[%c0_6, %c768] : memref<32x896xbf16, #tpu.memory_space<vmem>>, vector<32x128xbf16>
    %c0_7 = arith.constant 0 : index
    %c0_8 = arith.constant 0 : index
    %7 = vector.load %arg3[%c0_7, %c0_8] : memref<12x128xf32, #tpu.memory_space<vmem>>, vector<1x96xf32>
    %c1 = arith.constant 1 : index
    %c0_9 = arith.constant 0 : index
    %8 = vector.load %arg3[%c1, %c0_9] : memref<12x128xf32, #tpu.memory_space<vmem>>, vector<1x32xf32>
    %c2 = arith.constant 2 : index
    %c0_10 = arith.constant 0 : index
    %9 = vector.load %arg3[%c2, %c0_10] : memref<12x128xf32, #tpu.memory_space<vmem>>, vector<1x64xf32>
    %c3 = arith.constant 3 : index
    %c0_11 = arith.constant 0 : index
    %10 = vector.load %arg3[%c3, %c0_11] : memref<12x128xf32, #tpu.memory_space<vmem>>, vector<1x32xf32>
    %c4 = arith.constant 4 : index
    %c0_12 = arith.constant 0 : index
    %11 = vector.load %arg3[%c4, %c0_12] : memref<12x128xf32, #tpu.memory_space<vmem>>, vector<1x32xf32>
    %c5 = arith.constant 5 : index
    %c0_13 = arith.constant 0 : index
    %12 = vector.load %arg3[%c5, %c0_13] : memref<12x128xf32, #tpu.memory_space<vmem>>, vector<1x128xf32>
    %c6 = arith.constant 6 : index
    %c0_14 = arith.constant 0 : index
    %13 = vector.load %arg3[%c6, %c0_14] : memref<12x128xf32, #tpu.memory_space<vmem>>, vector<1x32xf32>
    %c7 = arith.constant 7 : index
    %c0_15 = arith.constant 0 : index
    %14 = vector.load %arg3[%c7, %c0_15] : memref<12x128xf32, #tpu.memory_space<vmem>>, vector<1x32xf32>
    %c8 = arith.constant 8 : index
    %c0_16 = arith.constant 0 : index
    %15 = vector.load %arg3[%c8, %c0_16] : memref<12x128xf32, #tpu.memory_space<vmem>>, vector<1x32xf32>
    %c9 = arith.constant 9 : index
    %c0_17 = arith.constant 0 : index
    %16 = vector.load %arg3[%c9, %c0_17] : memref<12x128xf32, #tpu.memory_space<vmem>>, vector<1x32xf32>
    %c10 = arith.constant 10 : index
    %c0_18 = arith.constant 0 : index
    %17 = vector.load %arg3[%c10, %c0_18] : memref<12x128xf32, #tpu.memory_space<vmem>>, vector<1x32xf32>
    %c11 = arith.constant 11 : index
    %c0_19 = arith.constant 0 : index
    %18 = vector.load %arg3[%c11, %c0_19] : memref<12x128xf32, #tpu.memory_space<vmem>>, vector<1x32xf32>
    %c0_20 = arith.constant 0 : index
    %c0_21 = arith.constant 0 : index
    %19 = vector.load %arg0[%c0_20, %c0_21] : memref<16x32xf32, #tpu.memory_space<vmem>>, vector<16x32xf32>
    %cst = arith.constant dense<0.000000e+00> : vector<16xf32>
    %20 = vector.multi_reduction <add>, %19, %cst [1] : vector<16x32xf32> to vector<16xf32>
    %21 = vector.shape_cast %20 : vector<16xf32> to vector<16x1xf32>
    %cst_22 = arith.constant 3.200000e+01 : f32
    %22 = vector.broadcast %cst_22 : f32 to vector<16x1xf32>
    %23 = arith.divf %21, %22 : vector<16x1xf32>
    %24 = vector.broadcast %23 : vector<16x1xf32> to vector<16x32xf32>
    %25 = arith.subf %19, %24 : vector<16x32xf32>
    %26 = arith.mulf %25, %25 : vector<16x32xf32>
    %cst_23 = arith.constant dense<0.000000e+00> : vector<16xf32>
    %27 = vector.multi_reduction <add>, %26, %cst_23 [1] : vector<16x32xf32> to vector<16xf32>
    %28 = vector.shape_cast %27 : vector<16xf32> to vector<16x1xf32>
    %cst_24 = arith.constant 3.200000e+01 : f32
    %29 = vector.broadcast %cst_24 : f32 to vector<16x1xf32>
    %30 = arith.divf %28, %29 : vector<16x1xf32>
    %31 = vector.broadcast %23 : vector<16x1xf32> to vector<16x32xf32>
    %32 = arith.subf %19, %31 : vector<16x32xf32>
    %cst_25 = arith.constant 9.99999996E-13 : f32
    %33 = vector.broadcast %cst_25 : f32 to vector<16x1xf32>
    %34 = arith.addf %30, %33 : vector<16x1xf32>
    %35 = math.rsqrt %34 : vector<16x1xf32>
    %36 = vector.broadcast %35 : vector<16x1xf32> to vector<16x32xf32>
    %37 = arith.mulf %32, %36 : vector<16x32xf32>
    %38 = vector.broadcast %13 : vector<1x32xf32> to vector<16x32xf32>
    %39 = arith.mulf %37, %38 : vector<16x32xf32>
    %40 = vector.broadcast %14 : vector<1x32xf32> to vector<16x32xf32>
    %41 = arith.addf %39, %40 : vector<16x32xf32>
    %42 = arith.truncf %41 : vector<16x32xf32> to vector<16x32xbf16>
    %cst_26 = arith.constant dense<0.000000e+00> : vector<16x96xf32>
    %43 = tpu.matmul %42, %0, %cst_26 {dimension_numbers = #tpu.dot_dimension_numbers<[1], [0], [0], [1], [0, 0, 1, 1], [], []>} : vector<16x32xbf16>, vector<32x96xbf16>, vector<16x96xf32> -> vector<16x96xf32>
    %44 = vector.broadcast %7 : vector<1x96xf32> to vector<16x96xf32>
    %45 = arith.addf %43, %44 : vector<16x96xf32>
    %c0_27 = arith.constant 0 : index
    %c0_28 = arith.constant 0 : index
    %46 = vector.load %arg1[%c0_27, %c0_28] : memref<16x16xf32, #tpu.memory_space<vmem>>, vector<16x16xf32>
    %cst_29 = arith.constant 0.000000e+00 : f32
    %47 = vector.broadcast %cst_29 : f32 to vector<16x32xf32>
    %48 = vector.extract_strided_slice %45 {offsets = [0, 0], sizes = [16, 16], strides = [1, 1]} : vector<16x96xf32> to vector<16x16xf32>
    %49 = arith.truncf %48 : vector<16x16xf32> to vector<16x16xbf16>
    %50 = vector.extract_strided_slice %45 {offsets = [0, 32], sizes = [16, 16], strides = [1, 1]} : vector<16x96xf32> to vector<16x16xf32>
    %51 = arith.truncf %50 : vector<16x16xf32> to vector<16x16xbf16>
    %52 = vector.extract_strided_slice %45 {offsets = [0, 64], sizes = [16, 16], strides = [1, 1]} : vector<16x96xf32> to vector<16x16xf32>
    %53 = arith.truncf %52 : vector<16x16xf32> to vector<16x16xbf16>
    %cst_30 = arith.constant dense<0.000000e+00> : vector<16x16xf32>
    %54 = tpu.matmul %49, %51, %cst_30 {dimension_numbers = #tpu.dot_dimension_numbers<[1], [1], [0], [0], [0, 0, 1, 0], [], []>} : vector<16x16xbf16>, vector<16x16xbf16>, vector<16x16xf32> -> vector<16x16xf32>
    %55 = arith.addf %54, %46 : vector<16x16xf32>
    %cst_31 = arith.constant dense<0xFF800000> : vector<16xf32>
    %56 = vector.multi_reduction <maximumf>, %55, %cst_31 [1] : vector<16x16xf32> to vector<16xf32>
    %57 = vector.shape_cast %56 : vector<16xf32> to vector<16x1xf32>
    %58 = vector.broadcast %57 : vector<16x1xf32> to vector<16x16xf32>
    %59 = arith.subf %55, %58 : vector<16x16xf32>
    %60 = math.exp %59 : vector<16x16xf32>
    %cst_32 = arith.constant dense<0.000000e+00> : vector<16xf32>
    %61 = vector.multi_reduction <add>, %60, %cst_32 [1] : vector<16x16xf32> to vector<16xf32>
    %62 = vector.shape_cast %61 : vector<16xf32> to vector<16x1xf32>
    %63 = tpu.reciprocal %62 {approx = true} : vector<16x1xf32> -> vector<16x1xf32>
    %64 = vector.broadcast %63 : vector<16x1xf32> to vector<16x16xf32>
    %65 = arith.mulf %60, %64 : vector<16x16xf32>
    %66 = arith.truncf %65 : vector<16x16xf32> to vector<16x16xbf16>
    %cst_33 = arith.constant dense<0.000000e+00> : vector<16x16xf32>
    %67 = tpu.matmul %66, %53, %cst_33 {dimension_numbers = #tpu.dot_dimension_numbers<[1], [0], [0], [1], [0, 0, 1, 1], [], []>} : vector<16x16xbf16>, vector<16x16xbf16>, vector<16x16xf32> -> vector<16x16xf32>
    %68 = arith.truncf %67 : vector<16x16xf32> to vector<16x16xbf16>
    %69 = vector.extract_strided_slice %1 {offsets = [0, 0], sizes = [16, 32], strides = [1, 1]} : vector<32x32xbf16> to vector<16x32xbf16>
    %cst_34 = arith.constant dense<0.000000e+00> : vector<16x32xf32>
    %70 = tpu.matmul %68, %69, %cst_34 {dimension_numbers = #tpu.dot_dimension_numbers<[1], [0], [0], [1], [0, 0, 1, 1], [], []>} : vector<16x16xbf16>, vector<16x32xbf16>, vector<16x32xf32> -> vector<16x32xf32>
    %71 = arith.addf %47, %70 : vector<16x32xf32>
    %72 = vector.extract_strided_slice %45 {offsets = [0, 16], sizes = [16, 16], strides = [1, 1]} : vector<16x96xf32> to vector<16x16xf32>
    %73 = arith.truncf %72 : vector<16x16xf32> to vector<16x16xbf16>
    %74 = vector.extract_strided_slice %45 {offsets = [0, 48], sizes = [16, 16], strides = [1, 1]} : vector<16x96xf32> to vector<16x16xf32>
    %75 = arith.truncf %74 : vector<16x16xf32> to vector<16x16xbf16>
    %76 = vector.extract_strided_slice %45 {offsets = [0, 80], sizes = [16, 16], strides = [1, 1]} : vector<16x96xf32> to vector<16x16xf32>
    %77 = arith.truncf %76 : vector<16x16xf32> to vector<16x16xbf16>
    %cst_35 = arith.constant dense<0.000000e+00> : vector<16x16xf32>
    %78 = tpu.matmul %73, %75, %cst_35 {dimension_numbers = #tpu.dot_dimension_numbers<[1], [1], [0], [0], [0, 0, 1, 0], [], []>} : vector<16x16xbf16>, vector<16x16xbf16>, vector<16x16xf32> -> vector<16x16xf32>
    %79 = arith.addf %78, %46 : vector<16x16xf32>
    %cst_36 = arith.constant dense<0xFF800000> : vector<16xf32>
    %80 = vector.multi_reduction <maximumf>, %79, %cst_36 [1] : vector<16x16xf32> to vector<16xf32>
    %81 = vector.shape_cast %80 : vector<16xf32> to vector<16x1xf32>
    %82 = vector.broadcast %81 : vector<16x1xf32> to vector<16x16xf32>
    %83 = arith.subf %79, %82 : vector<16x16xf32>
    %84 = math.exp %83 : vector<16x16xf32>
    %cst_37 = arith.constant dense<0.000000e+00> : vector<16xf32>
    %85 = vector.multi_reduction <add>, %84, %cst_37 [1] : vector<16x16xf32> to vector<16xf32>
    %86 = vector.shape_cast %85 : vector<16xf32> to vector<16x1xf32>
    %87 = tpu.reciprocal %86 {approx = true} : vector<16x1xf32> -> vector<16x1xf32>
    %88 = vector.broadcast %87 : vector<16x1xf32> to vector<16x16xf32>
    %89 = arith.mulf %84, %88 : vector<16x16xf32>
    %90 = arith.truncf %89 : vector<16x16xf32> to vector<16x16xbf16>
    %cst_38 = arith.constant dense<0.000000e+00> : vector<16x16xf32>
    %91 = tpu.matmul %90, %77, %cst_38 {dimension_numbers = #tpu.dot_dimension_numbers<[1], [0], [0], [1], [0, 0, 1, 1], [], []>} : vector<16x16xbf16>, vector<16x16xbf16>, vector<16x16xf32> -> vector<16x16xf32>
    %92 = arith.truncf %91 : vector<16x16xf32> to vector<16x16xbf16>
    %93 = vector.extract_strided_slice %1 {offsets = [16, 0], sizes = [16, 32], strides = [1, 1]} : vector<32x32xbf16> to vector<16x32xbf16>
    %cst_39 = arith.constant dense<0.000000e+00> : vector<16x32xf32>
    %94 = tpu.matmul %92, %93, %cst_39 {dimension_numbers = #tpu.dot_dimension_numbers<[1], [0], [0], [1], [0, 0, 1, 1], [], []>} : vector<16x16xbf16>, vector<16x32xbf16>, vector<16x32xf32> -> vector<16x32xf32>
    %95 = arith.addf %71, %94 : vector<16x32xf32>
    %96 = vector.broadcast %8 : vector<1x32xf32> to vector<16x32xf32>
    %97 = arith.addf %95, %96 : vector<16x32xf32>
    %98 = arith.addf %41, %97 : vector<16x32xf32>
    %cst_40 = arith.constant dense<0.000000e+00> : vector<16xf32>
    %99 = vector.multi_reduction <add>, %98, %cst_40 [1] : vector<16x32xf32> to vector<16xf32>
    %100 = vector.shape_cast %99 : vector<16xf32> to vector<16x1xf32>
    %cst_41 = arith.constant 3.200000e+01 : f32
    %101 = vector.broadcast %cst_41 : f32 to vector<16x1xf32>
    %102 = arith.divf %100, %101 : vector<16x1xf32>
    %103 = vector.broadcast %102 : vector<16x1xf32> to vector<16x32xf32>
    %104 = arith.subf %98, %103 : vector<16x32xf32>
    %105 = arith.mulf %104, %104 : vector<16x32xf32>
    %cst_42 = arith.constant dense<0.000000e+00> : vector<16xf32>
    %106 = vector.multi_reduction <add>, %105, %cst_42 [1] : vector<16x32xf32> to vector<16xf32>
    %107 = vector.shape_cast %106 : vector<16xf32> to vector<16x1xf32>
    %cst_43 = arith.constant 3.200000e+01 : f32
    %108 = vector.broadcast %cst_43 : f32 to vector<16x1xf32>
    %109 = arith.divf %107, %108 : vector<16x1xf32>
    %110 = vector.broadcast %102 : vector<16x1xf32> to vector<16x32xf32>
    %111 = arith.subf %98, %110 : vector<16x32xf32>
    %cst_44 = arith.constant 9.99999996E-13 : f32
    %112 = vector.broadcast %cst_44 : f32 to vector<16x1xf32>
    %113 = arith.addf %109, %112 : vector<16x1xf32>
    %114 = math.rsqrt %113 : vector<16x1xf32>
    %115 = vector.broadcast %114 : vector<16x1xf32> to vector<16x32xf32>
    %116 = arith.mulf %111, %115 : vector<16x32xf32>
    %117 = vector.broadcast %15 : vector<1x32xf32> to vector<16x32xf32>
    %118 = arith.mulf %116, %117 : vector<16x32xf32>
    %119 = vector.broadcast %16 : vector<1x32xf32> to vector<16x32xf32>
    %120 = arith.addf %118, %119 : vector<16x32xf32>
    %121 = arith.truncf %120 : vector<16x32xf32> to vector<16x32xbf16>
    %cst_45 = arith.constant dense<0.000000e+00> : vector<16x64xf32>
    %122 = tpu.matmul %121, %2, %cst_45 {dimension_numbers = #tpu.dot_dimension_numbers<[1], [0], [0], [1], [0, 0, 1, 1], [], []>} : vector<16x32xbf16>, vector<32x64xbf16>, vector<16x64xf32> -> vector<16x64xf32>
    %123 = vector.broadcast %9 : vector<1x64xf32> to vector<16x64xf32>
    %124 = arith.addf %122, %123 : vector<16x64xf32>
    %cst_46 = arith.constant 5.000000e-01 : f32
    %125 = vector.broadcast %cst_46 : f32 to vector<16x64xf32>
    %126 = arith.mulf %125, %124 : vector<16x64xf32>
    %cst_47 = arith.constant 4.471500e-02 : f32
    %127 = vector.broadcast %cst_47 : f32 to vector<16x64xf32>
    %128 = arith.mulf %127, %124 : vector<16x64xf32>
    %129 = arith.mulf %128, %124 : vector<16x64xf32>
    %130 = arith.mulf %129, %124 : vector<16x64xf32>
    %131 = arith.addf %124, %130 : vector<16x64xf32>
    %cst_48 = arith.constant 0.797884583 : f32
    %132 = vector.broadcast %cst_48 : f32 to vector<16x64xf32>
    %133 = arith.mulf %132, %131 : vector<16x64xf32>
    %134 = math.tanh %133 : vector<16x64xf32>
    %cst_49 = arith.constant 1.000000e+00 : f32
    %135 = vector.broadcast %cst_49 : f32 to vector<16x64xf32>
    %136 = arith.addf %135, %134 : vector<16x64xf32>
    %137 = arith.mulf %126, %136 : vector<16x64xf32>
    %138 = arith.truncf %137 : vector<16x64xf32> to vector<16x64xbf16>
    %139 = vector.extract_strided_slice %138 {offsets = [0, 0], sizes = [16, 32], strides = [1, 1]} : vector<16x64xbf16> to vector<16x32xbf16>
    %cst_50 = arith.constant dense<0.000000e+00> : vector<16x32xf32>
    %140 = tpu.matmul %139, %3, %cst_50 {dimension_numbers = #tpu.dot_dimension_numbers<[1], [0], [0], [1], [0, 0, 1, 1], [], []>} : vector<16x32xbf16>, vector<32x32xbf16>, vector<16x32xf32> -> vector<16x32xf32>
    %141 = vector.extract_strided_slice %138 {offsets = [0, 32], sizes = [16, 32], strides = [1, 1]} : vector<16x64xbf16> to vector<16x32xbf16>
    %cst_51 = arith.constant dense<0.000000e+00> : vector<16x32xf32>
    %142 = tpu.matmul %141, %4, %cst_51 {dimension_numbers = #tpu.dot_dimension_numbers<[1], [0], [0], [1], [0, 0, 1, 1], [], []>} : vector<16x32xbf16>, vector<32x32xbf16>, vector<16x32xf32> -> vector<16x32xf32>
    %143 = arith.addf %140, %142 : vector<16x32xf32>
    %144 = vector.broadcast %10 : vector<1x32xf32> to vector<16x32xf32>
    %145 = arith.addf %143, %144 : vector<16x32xf32>
    %146 = arith.addf %120, %145 : vector<16x32xf32>
    %cst_52 = arith.constant dense<0.000000e+00> : vector<16xf32>
    %147 = vector.multi_reduction <add>, %146, %cst_52 [1] : vector<16x32xf32> to vector<16xf32>
    %148 = vector.shape_cast %147 : vector<16xf32> to vector<16x1xf32>
    %cst_53 = arith.constant 3.200000e+01 : f32
    %149 = vector.broadcast %cst_53 : f32 to vector<16x1xf32>
    %150 = arith.divf %148, %149 : vector<16x1xf32>
    %151 = vector.broadcast %150 : vector<16x1xf32> to vector<16x32xf32>
    %152 = arith.subf %146, %151 : vector<16x32xf32>
    %153 = arith.mulf %152, %152 : vector<16x32xf32>
    %cst_54 = arith.constant dense<0.000000e+00> : vector<16xf32>
    %154 = vector.multi_reduction <add>, %153, %cst_54 [1] : vector<16x32xf32> to vector<16xf32>
    %155 = vector.shape_cast %154 : vector<16xf32> to vector<16x1xf32>
    %cst_55 = arith.constant 3.200000e+01 : f32
    %156 = vector.broadcast %cst_55 : f32 to vector<16x1xf32>
    %157 = arith.divf %155, %156 : vector<16x1xf32>
    %158 = vector.broadcast %150 : vector<16x1xf32> to vector<16x32xf32>
    %159 = arith.subf %146, %158 : vector<16x32xf32>
    %cst_56 = arith.constant 9.99999996E-13 : f32
    %160 = vector.broadcast %cst_56 : f32 to vector<16x1xf32>
    %161 = arith.addf %157, %160 : vector<16x1xf32>
    %162 = math.rsqrt %161 : vector<16x1xf32>
    %163 = vector.broadcast %162 : vector<16x1xf32> to vector<16x32xf32>
    %164 = arith.mulf %159, %163 : vector<16x32xf32>
    %165 = vector.broadcast %17 : vector<1x32xf32> to vector<16x32xf32>
    %166 = arith.mulf %164, %165 : vector<16x32xf32>
    %167 = vector.broadcast %18 : vector<1x32xf32> to vector<16x32xf32>
    %168 = arith.addf %166, %167 : vector<16x32xf32>
    %169 = tpu.iota {dimensions = array<i32: 0>} : vector<8x16xi32>
    %170 = tpu.iota {dimensions = array<i32: 1>} : vector<8x16xi32>
    %c2_i32 = arith.constant 2 : i32
    %171 = vector.broadcast %c2_i32 : i32 to vector<8x16xi32>
    %172 = arith.cmpi slt, %169, %171 : vector<8x16xi32>
    %c8_i32 = arith.constant 8 : i32
    %173 = vector.broadcast %c8_i32 : i32 to vector<8x16xi32>
    %174 = arith.muli %169, %173 : vector<8x16xi32>
    %c0_i32 = arith.constant 0 : i32
    %175 = vector.broadcast %c0_i32 : i32 to vector<8x16xi32>
    %176 = arith.select %172, %174, %175 : vector<8x16xi1>, vector<8x16xi32>
    %177 = arith.cmpi eq, %170, %176 : vector<8x16xi32>
    %178 = arith.extui %177 : vector<8x16xi1> to vector<8x16xi32>
    %179 = arith.sitofp %178 : vector<8x16xi32> to vector<8x16xf32>
    %180 = arith.truncf %179 : vector<8x16xf32> to vector<8x16xbf16>
    %181 = arith.truncf %168 : vector<16x32xf32> to vector<16x32xbf16>
    %cst_57 = arith.constant dense<0.000000e+00> : vector<8x32xf32>
    %182 = tpu.matmul %180, %181, %cst_57 {dimension_numbers = #tpu.dot_dimension_numbers<[1], [0], [0], [1], [0, 0, 1, 1], [], []>} : vector<8x16xbf16>, vector<16x32xbf16>, vector<8x32xf32> -> vector<8x32xf32>
    %183 = arith.truncf %182 : vector<8x32xf32> to vector<8x32xbf16>
    %cst_58 = arith.constant dense<0.000000e+00> : vector<8x32xf32>
    %184 = tpu.matmul %183, %5, %cst_58 {dimension_numbers = #tpu.dot_dimension_numbers<[1], [0], [0], [1], [0, 0, 1, 1], [], []>} : vector<8x32xbf16>, vector<32x32xbf16>, vector<8x32xf32> -> vector<8x32xf32>
    %185 = vector.broadcast %11 : vector<1x32xf32> to vector<8x32xf32>
    %186 = arith.addf %184, %185 : vector<8x32xf32>
    %187 = math.tanh %186 : vector<8x32xf32>
    %188 = arith.truncf %187 : vector<8x32xf32> to vector<8x32xbf16>
    %cst_59 = arith.constant dense<0.000000e+00> : vector<8x128xf32>
    %189 = tpu.matmul %188, %6, %cst_59 {dimension_numbers = #tpu.dot_dimension_numbers<[1], [0], [0], [1], [0, 0, 1, 1], [], []>} : vector<8x32xbf16>, vector<32x128xbf16>, vector<8x128xf32> -> vector<8x128xf32>
    %190 = vector.broadcast %12 : vector<1x128xf32> to vector<8x128xf32>
    %191 = arith.addf %189, %190 : vector<8x128xf32>
    %c0_60 = arith.constant 0 : index
    %c0_61 = arith.constant 0 : index
    %192 = vector.load %arg4[%c0_60, %c0_61] : memref<8x128xf32, #tpu.memory_space<vmem>>, vector<8x128xf32>
    tpu.vector_store %arg4[%c0_60, %c0_61], %191 {strides = array<i32>} : memref<8x128xf32, #tpu.memory_space<vmem>>, vector<8x128xf32>,
    return
  }
}

</mosaic_0001>

<bundles_post_ra>
// kernel: bert_classifier_forward.1
= control target key start
LH: loop header
LB: loop body
LE: loop exit
PB: predicated region body
PF: predicated region fallthrough
CT: control target
= control target key end

     0   :  { %vm60_vm0 = vcmask 261120   ;;  %v1193_v14 = vmov 0.0   ;;  %vm1194_vm1 = vmmov 0   ;;  %s1195_s28 = smov 80   ;;  %s1196_s29 = smov 96   ;;  %vm167_vm2 = vcmask 130048   ;;  %s1425_s0 = inlined_call_operand.vmem [shape: f32[16,32], index: 0, kind: input, shape index: {}]   ;;  %s1426_s2 = inlined_call_operand.vmem [shape: bf16[32,896], index: 2, kind: input, shape index: {}]   ;;  %s1427_s3 = inlined_call_operand.vmem [shape: f32[12,128], index: 3, kind: input, shape index: {}]   ;;  %s1428_s1 = inlined_call_operand.vmem [shape: f32[16,16], index: 1, kind: input, shape index: {}]   ;;  %s1429_s4 = inlined_call_operand.vmem [shape: f32[8,128], index: 4, kind: output, shape index: {}]  }
   0x1   :  { %v58_v0 = vld [vmem:[%s1425_s0] sm:$0xff]  ;;  %v59_v1 = vld [vmem:[%s1425_s0 + $0x8] sm:$0xff]  ;;  %1048 = vmatprep.subr.bf16.mxu0 %v1193_v14  ;;  %1056 = vmatprep.subr.bf16.mxu1 %v1193_v14  ;;  %v1146_v16 = vld [vmem:[%s1426_s2 + $0x38] ss:$28 sps:$4 sm:$0xff]   ;;  %s1197_s30 = smov 112   ;;  %s1199_s9 = smov 48  }
   0x2   :  { %v61_v2 = vsel %vm60_vm0, %v58_v0, 0.0  ;;  %v64_v3 = vsel %vm60_vm0, %v59_v1, 0.0  ;;  %v1145_v15 = vld [vmem:[%s1426_s2] ss:$28 sps:$4 sm:$0xff]   ;;  %1052 = vmatprep.mubr.msk.bf16.mxu0 %vm1194_vm1, %v1193_v14  ;;  %1058 = vmatprep.mubr.msk.bf16.mxu1 %vm1194_vm1, %v1193_v14  ;;  %v976_v25 = vld [vmem:[%s1427_s3 + $0x6] ss:$0 sm:$0xff] }
   0x3   :  { %62 = vadd.xlane.f32.xlu0 %v61_v2  ;;  %1049 = vmatpush3.bf16.msra.mxu0 %v1145_v15  ;;  %v977_v29 = vld [vmem:[%s1427_s3 + $0x7] ss:$0 sm:$0xff]  ;;  %v978_v34 = vld [vmem:[%s1427_s3] ss:$0 sm:$0xff]  ;;  %v162_v49 = vld [vmem:[%s1428_s1 + $0x8] sm:$0xff] }
   0x4   :  { %1050 = vmatprep.subr.bf16.mxu0 %v1193_v14  ;;  %v161_v47 = vld [vmem:[%s1428_s1] sm:$0xff]  ;;  %s1198_s1 = smov 64  }
   0x7   :  { %65 = vadd.xlane.f32.xlu0 %v64_v3  ;;  %1051 = vmatpush3.bf16.msra.mxu0 %v1146_v16 }
   0x8   :  { %1062 = vmatprep.subr.bf16.mxu0 %v1193_v14 }
  0x90   :  { %v63_v4 = vpop.xlane.xlu0 %62 }
  0x91   :  { %v68_v5 = vmul.f32 0.03125, %v63_v4 }
  0x93   :  { %v70_v6 = vsub.f32 %v58_v0, %v68_v5 }
  0x94   :  { %v66_v7 = vpop.xlane.xlu0 %65 }
  0x95   :  { %v69_v8 = vmul.f32 0.03125, %v66_v7  ;;  %v72_v9 = vmul.f32 %v70_v6, %v70_v6 }
  0x97   :  { %v71_v10 = vsub.f32 %v59_v1, %v69_v8  ;;  %v74_v11 = vsel %vm60_vm0, %v72_v9, 0.0 }
  0x98   :  { %75 = vadd.xlane.f32.xlu1 %v74_v11 }
  0x99   :  { %v73_v12 = vmul.f32 %v71_v10, %v71_v10 }
  0x9b   :  { %v77_v13 = vsel %vm60_vm0, %v73_v12, 0.0 }
  0x9c   :  { %78 = vadd.xlane.f32.xlu1 %v77_v13 }
 0x125   :  { %v76_v17 = vpop.xlane.xlu1 %75 }
 0x126   :  { %v80_v18 = vmul.f32 0.03125, %v76_v17 }
 0x128   :  { %v82_v19 = vadd.f32 1e-12, %v80_v18 }
 0x129   :  { %v79_v20 = vpop.xlane.xlu1 %78 }
 0x12a   :  { %1159 = vrsqrt.f32 %v82_v19  ;;  %v81_v21 = vmul.f32 0.03125, %v79_v20 }
 0x12c   :  { %v83_v22 = vadd.f32 1e-12, %v81_v21 }
 0x12e   :  { %1161 = vrsqrt.f32 %v83_v22 }
 0x134   :  { %v1160_v23 = vpop.eup %1159 }
 0x135   :  { %v86_v24 = vmul.f32 %v1160_v23, %v70_v6 }
 0x137   :  { %v92_v28 = vmul.f32 %v976_v25, %v86_v24 }
 0x138   :  { %v1162_v26 = vpop.eup %1161 }
 0x139   :  { %v87_v27 = vmul.f32 %v1162_v26, %v71_v10  ;;  %v1255_v31 = vadd.f32 %v977_v29, %v92_v28 }
 0x13b   :  { %v93_v30 = vmul.f32 %v976_v25, %v87_v27 }
 0x13d   :  { %v1257_v32 = vadd.f32 %v977_v29, %v93_v30 }
 0x13f   :  { %v100_v33 = vpack.c.bf16 %v1257_v32, %v1255_v31 }
 0x141   :  { %1053 = vmatmul.mubr.msk.bf16.vlgmr.msra.gmra.mrb[0].mxu0 %vm60_vm0, %v100_v33 }
 0x142   :  { %1064 = vmatprep.mubr.msk.bf16.mxu0 %vm1194_vm1, %v1193_v14 }
 0x214   :  { %v154_v35 = vpop.f32.mrb[0].mxu0 }
 0x215   :  { %v1054_v36 = vpop.f32.mrb[1].mxu0  ;;  %v155_v38 = vadd.f32 %v978_v34, %v154_v35 }
 0x216   :  { %v157_v37 = vpop.f32.mrb[2].mxu0 }
 0x217   :  { %v158_v39 = vadd.f32 %v978_v34, %v157_v37  ;;  %v1055_v40 = vpop.f32.mrb[3].mxu0 }
 0x218   :  { %v1147_v40 = vld [vmem:[%s1426_s2 + $0x4] ss:$28 sps:$4 sm:$0xff]  }
 0x219   :  { %v1267_v41 = vpack.c.bf16 %v158_v39, %v155_v38 }
 0x21b   :  { %288 = vrot.lane.b32.xlu1 %v1267_v41, %s1195_s28  ;;  %165 = vrot.lane.b32.xlu0 %v1267_v41, %s1196_s29 }
 0x21f   :  { %286 = vrot.lane.b32.xlu1 %v1267_v41, %s1197_s30 }
 0x28d   :  { %v166_v42 = vpop.permute.xlu0 %165  ;;  %v289_v44 = vpop.permute.xlu1 %288 }
 0x28e   :  { %v172_v43 = vsel %vm167_vm2, %v166_v42, 0  ;;  %v294_v45 = vsel %vm167_vm2, %v289_v44, 0 }
 0x28f   :  { %1057 = vmatpush3.bf16.xpose.msra.mxu1 %v172_v43 }
 0x290   :  { %1068 = vmatprep.subr.bf16.mxu1 %v1193_v14 }
 0x291   :  { %v287_v46 = vpop.permute.xlu1 %286 }
 0x296   :  { %1059 = vmatmul.mubr.msk.bf16.vlgmr.msra.gmra.mrb[0].mxu1 %vm167_vm2, %v1267_v41 }
 0x297   :  { %1069 = vmatpush3.bf16.xpose.msra.mxu1 %v294_v45  ;;  %1070 = vmatprep.mubr.msk.bf16.mxu1 %vm1194_vm1, %v1193_v14 }
 0x298   :  { %1080 = vmatprep.subr.bf16.mxu1 %v1193_v14 }
 0x29e   :  { %1071 = vmatmul.mubr.msk.bf16.vlgmr.msra.gmra.mrb[4].mxu1 %vm167_vm2, %v287_v46 }
 0x29f   :  { %1082 = vmatprep.mubr.msk.bf16.mxu1 %vm1194_vm1, %v1193_v14 }
 0x369   :  { %v208_v48 = vpop.f32.mrb[0].mxu1 }
 0x36a   :  { %v209_v50 = vadd.f32 %v208_v48, %v161_v47  ;;  %v1060_v51 = vpop.f32.mrb[1].mxu1 }
 0x36b   :  { %v211_v52 = vpop.f32.mrb[2].mxu1 }
 0x36c   :  { %v212_v53 = vadd.f32 %v211_v52, %v162_v49  ;;  %v1061_v54 = vpop.f32.mrb[3].mxu1  ;;  %v215_v55 = vsel %vm167_vm2, %v209_v50, -inf }
 0x36d   :  { %216 = vmax.xlane.f32.xlu1 %v215_v55 }
 0x36e   :  { %v218_v56 = vsel %vm167_vm2, %v212_v53, -inf }
 0x36f   :  { %219 = vmax.xlane.f32.xlu0 %v218_v56  ;;  %v990_v56 = vld [vmem:[%s1427_s3 + $0x1] ss:$0 sm:$0xff] }
 0x371   :  { %v330_v57 = vpop.f32.mrb[4].mxu1 }
 0x372   :  { %v331_v58 = vadd.f32 %v330_v57, %v161_v47  ;;  %v1072_v59 = vpop.f32.mrb[5].mxu1 }
 0x373   :  { %v333_v60 = vpop.f32.mrb[6].mxu1 }
 0x374   :  { %v334_v61 = vadd.f32 %v333_v60, %v162_v49  ;;  %v1073_v62 = vpop.f32.mrb[7].mxu1  ;;  %v337_v63 = vsel %vm167_vm2, %v331_v58, -inf }
 0x375   :  { %338 = vmax.xlane.f32.xlu0 %v337_v63 }
 0x376   :  { %v340_v0 = vsel %vm167_vm2, %v334_v61, -inf }
 0x379   :  { %341 = vmax.xlane.f32.xlu0 %v340_v0 }
 0x3fa   :  { %v217_v1 = vpop.xlane.xlu1 %216 }
 0x3fb   :  { %v221_v2 = vsub.f32 %v209_v50, %v217_v1 }
 0x3fc   :  { %v220_v3 = vpop.xlane.xlu0 %219 }
 0x3fd   :  { %v223_v4 = vmul.f32 1.442695, %v221_v2  ;;  %v222_v5 = vsub.f32 %v212_v53, %v220_v3 }
 0x3ff   :  { %1163 = vpow2.f32 %v223_v4  ;;  %v225_v6 = vmul.f32 1.442695, %v222_v5 }
 0x401   :  { %1165 = vpow2.f32 %v225_v6 }
 0x402   :  { %v339_v7 = vpop.xlane.xlu0 %338 }
 0x403   :  { %v343_v8 = vsub.f32 %v331_v58, %v339_v7 }
 0x405   :  { %v345_v9 = vmul.f32 1.442695, %v343_v8 }
 0x406   :  { %v342_v10 = vpop.xlane.xlu0 %341 }
 0x407   :  { %1167 = vpow2.f32 %v345_v9  ;;  %v344_v11 = vsub.f32 %v334_v61, %v342_v10 }
 0x409   :  { %v1164_v12 = vpop.eup %1163  ;;  %v347_v13 = vmul.f32 1.442695, %v344_v11 }
 0x40a   :  { %v227_v15 = vsel %vm167_vm2, %v1164_v12, 0.0 }
 0x40b   :  { %v1166_v16 = vpop.eup %1165  ;;  %1169 = vpow2.f32 %v347_v13  ;;  %228 = vadd.xlane.f32.xlu1 %v227_v15  ;;  %v1150_v15 = vld [vmem:[%s1426_s2 + $0x40] ss:$28 sps:$4 sm:$0xff]  }
 0x40c   :  { %v230_v17 = vsel %vm167_vm2, %v1166_v16, 0.0 }
 0x40d   :  { %231 = vadd.xlane.f32.xlu0 %v230_v17 }
 0x411   :  { %v1168_v18 = vpop.eup %1167 }
 0x412   :  { %v349_v19 = vsel %vm167_vm2, %v1168_v18, 0.0 }
 0x413   :  { %350 = vadd.xlane.f32.xlu1 %v349_v19 }
 0x415   :  { %v1170_v20 = vpop.eup %1169 }
 0x416   :  { %v352_v21 = vsel %vm167_vm2, %v1170_v20, 0.0 }
 0x417   :  { %353 = vadd.xlane.f32.xlu0 %v352_v21 }
 0x424   :  { %238 = vrot.lane.b32.xlu1 %v1267_v41, %s1198_s1 }
 0x42d   :  { %360 = vrot.lane.b32.xlu0 %v1267_v41, %s1199_s9  ;;  %v1148_v41 = vld [vmem:[%s1426_s2 + $0x3c] ss:$28 sps:$4 sm:$0xff]  }
 0x42e   :  { %1081 = vmatpush3.bf16.msra.mxu1 %v1148_v41 }
 0x42f   :  { %1092 = vmatprep.subr.bf16.mxu1 %v1193_v14 }
 0x498   :  { %v229_v22 = vpop.xlane.xlu1 %228 }
 0x499   :  { %1171 = vrcp.f32 %v229_v22 }
 0x49a   :  { %v232_v23 = vpop.xlane.xlu0 %231 }
 0x49b   :  { %1173 = vrcp.f32 %v232_v23  ;;  %v991_v23 = vld [vmem:[%s1427_s3 + $0x8] ss:$0 sm:$0xff] }
 0x4a0   :  { %v351_v24 = vpop.xlane.xlu1 %350 }
 0x4a1   :  { %1175 = vrcp.f32 %v351_v24 }
 0x4a3   :  { %v1172_v25 = vpop.eup %1171 }
 0x4a4   :  { %v239_v26 = vpop.permute.xlu1 %238  ;;  %v354_v27 = vpop.xlane.xlu0 %353  ;;  %v235_v29 = vmul.f32 %v1172_v25, %v1164_v12 }
 0x4a5   :  { %v1174_v28 = vpop.eup %1173  ;;  %1177 = vrcp.f32 %v354_v27  ;;  %1063 = vmatpush3.bf16.msra.mxu0 %v239_v26 }
 0x4a6   :  { %v236_v30 = vmul.f32 %v1174_v28, %v1166_v16  ;;  %1074 = vmatprep.subr.bf16.mxu0 %v1193_v14  ;;  %v992_v28 = vld [vmem:[%s1427_s3 + $0x9] ss:$0 sm:$0xff] }
 0x4a8   :  { %v361_v33 = vpop.permute.xlu0 %360  ;;  %v237_v34 = vpack.c.bf16 %v236_v30, %v235_v29 }
 0x4aa   :  { %1065 = vmatmul.mubr.msk.bf16.vlgmr.msra.gmra.mrb[4].mxu0 %vm167_vm2, %v237_v34 }
 0x4ab   :  { %1075 = vmatpush3.bf16.msra.mxu0 %v361_v33  ;;  %1076 = vmatprep.mubr.msk.bf16.mxu0 %vm1194_vm1, %v1193_v14  ;;  %v1176_v35 = vpop.eup %1175 }
 0x4ac   :  { %1086 = vmatprep.subr.bf16.mxu0 %v1193_v14  ;;  %v357_v37 = vmul.f32 %v1176_v35, %v1168_v18  ;;  %v1151_v35 = vld [vmem:[%s1426_s2 + $0xc] ss:$28 sps:$4 sm:$0xff]  }
 0x4af   :  { %v1178_v36 = vpop.eup %1177 }
 0x4b0   :  { %v358_v38 = vmul.f32 %v1178_v36, %v1170_v20  ;;  %v1152_v36 = vld [vmem:[%s1426_s2 + $0x44] ss:$28 sps:$4 sm:$0xff]  }
 0x4b2   :  { %v359_v39 = vpack.c.bf16 %v358_v38, %v357_v37  ;;  %v1153_v37 = vld [vmem:[%s1426_s2 + $0x10] ss:$28 sps:$4 sm:$0xff]   ;;  %v1154_v38 = vld [vmem:[%s1426_s2 + $0x48] ss:$28 sps:$4 sm:$0xff]  }
 0x4b4   :  { %1077 = vmatmul.mubr.msk.bf16.vlgmr.msra.gmra.mrb[8].mxu0 %vm167_vm2, %v359_v39  ;;  %v993_v39 = vld [vmem:[%s1427_s3 + $0x2] ss:$0 sm:$0xff] }
 0x4b5   :  { %1088 = vmatprep.mubr.msk.bf16.mxu0 %vm1194_vm1, %v1193_v14  ;;  %1087 = vmatpush3.bf16.msra.mxu0 %v1147_v40 }
 0x4b6   :  { %1100 = vmatprep.subr.bf16.mxu0 %v1193_v14 }
 0x57d   :  { %v278_v42 = vpop.f32.mrb[4].mxu0 }
 0x57e   :  { %v1066_v43 = vpop.f32.mrb[5].mxu0 }
 0x57f   :  { %v281_v44 = vpop.f32.mrb[6].mxu0 }
 0x580   :  { %v285_v45 = vpack.c.bf16 %v281_v44, %v278_v42  ;;  %v1067_v46 = vpop.f32.mrb[7].mxu0 }
 0x582   :  { %1089 = vmatmul.mubr.msk.bf16.vlgmr.msra.gmra.mrb[12].mxu0 %vm167_vm2, %v285_v45 }
 0x583   :  { %1104 = vmatprep.mubr.msk.bf16.mxu0 %vm1194_vm1, %v1193_v14  ;;  %1101 = vmatpush3.bf16.msra.mxu0 %v1153_v37 }
 0x584   :  { %1102 = vmatprep.subr.bf16.mxu0 %v1193_v14 }
 0x587   :  { %v400_v47 = vpop.f32.mrb[8].mxu0  ;;  %1103 = vmatpush3.bf16.msra.mxu0 %v1154_v38 }
 0x588   :  { %v1078_v48 = vpop.f32.mrb[9].mxu0  ;;  %1116 = vmatprep.subr.bf16.mxu0 %v1193_v14 }
 0x589   :  { %v403_v49 = vpop.f32.mrb[10].mxu0 }
 0x58a   :  { %v407_v50 = vpack.c.bf16 %v403_v49, %v400_v47  ;;  %v1079_v51 = vpop.f32.mrb[11].mxu0 }
 0x58c   :  { %1083 = vmatmul.mubr.msk.bf16.vlgmr.msra.gmra.mrb[8].mxu1 %vm167_vm2, %v407_v50 }
 0x58d   :  { %1096 = vmatprep.mubr.msk.bf16.mxu1 %vm1194_vm1, %v1193_v14 }
 0x655   :  { %v501_v52 = vpop.f32.mrb[12].mxu0 }
 0x656   :  { %v1090_v53 = vpop.f32.mrb[13].mxu0 }
 0x657   :  { %v504_v54 = vpop.f32.mrb[14].mxu0 }
 0x658   :  { %v1091_v55 = vpop.f32.mrb[15].mxu0 }
 0x65f   :  { %v451_v57 = vpop.f32.mrb[8].mxu1 }
 0x660   :  { %v502_v58 = vadd.f32 %v501_v52, %v451_v57  ;;  %v1084_v59 = vpop.f32.mrb[9].mxu1 }
 0x661   :  { %v454_v60 = vpop.f32.mrb[10].mxu1 }
 0x662   :  { %v512_v61 = vadd.f32 %v990_v56, %v502_v58  ;;  %v505_v62 = vadd.f32 %v504_v54, %v454_v60  ;;  %v1085_v63 = vpop.f32.mrb[11].mxu1 }
 0x664   :  { %v513_v0 = vadd.f32 %v990_v56, %v505_v62  ;;  %v514_v1 = vadd.f32 %v512_v61, %v1255_v31 }
 0x666   :  { %v516_v2 = vsel %vm60_vm0, %v514_v1, 0.0  ;;  %v515_v3 = vadd.f32 %v513_v0, %v1257_v32  ;;  %v1149_v32 = vld [vmem:[%s1426_s2 + $0x8] ss:$28 sps:$4 sm:$0xff]  }
 0x667   :  { %517 = vadd.xlane.f32.xlu1 %v516_v2  ;;  %1093 = vmatpush3.bf16.msra.mxu1 %v1149_v32 }
 0x668   :  { %v519_v4 = vsel %vm60_vm0, %v515_v3, 0.0  ;;  %1094 = vmatprep.subr.bf16.mxu1 %v1193_v14 }
 0x669   :  { %520 = vadd.xlane.f32.xlu0 %v519_v4 }
 0x66b   :  { %1095 = vmatpush3.bf16.msra.mxu1 %v1150_v15 }
 0x66c   :  { %1108 = vmatprep.subr.bf16.mxu1 %v1193_v14 }
 0x6f4   :  { %v518_v5 = vpop.xlane.xlu1 %517 }
 0x6f5   :  { %v522_v6 = vmul.f32 0.03125, %v518_v5 }
 0x6f6   :  { %v521_v7 = vpop.xlane.xlu0 %520 }
 0x6f7   :  { %v524_v8 = vsub.f32 %v514_v1, %v522_v6  ;;  %v523_v9 = vmul.f32 0.03125, %v521_v7  ;;  %v1003_v6 = vld [vmem:[%s1427_s3 + $0x3] ss:$0 sm:$0xff] }
 0x6f9   :  { %v525_v10 = vsub.f32 %v515_v3, %v523_v9  ;;  %v526_v11 = vmul.f32 %v524_v8, %v524_v8 }
 0x6fb   :  { %v528_v12 = vsel %vm60_vm0, %v526_v11, 0.0  ;;  %v527_v13 = vmul.f32 %v525_v10, %v525_v10 }
 0x6fc   :  { %529 = vadd.xlane.f32.xlu1 %v528_v12 }
 0x6fd   :  { %v531_v31 = vsel %vm60_vm0, %v527_v13, 0.0 }
 0x6fe   :  { %532 = vadd.xlane.f32.xlu0 %v531_v31 }
 0x789   :  { %v530_v16 = vpop.xlane.xlu1 %529 }
 0x78a   :  { %v534_v17 = vmul.f32 0.03125, %v530_v16 }
 0x78b   :  { %v533_v18 = vpop.xlane.xlu0 %532 }
 0x78c   :  { %v536_v19 = vadd.f32 1e-12, %v534_v17  ;;  %v535_v20 = vmul.f32 0.03125, %v533_v18 }
 0x78e   :  { %1179 = vrsqrt.f32 %v536_v19  ;;  %v537_v21 = vadd.f32 1e-12, %v535_v20 }
 0x790   :  { %1181 = vrsqrt.f32 %v537_v21 }
 0x798   :  { %v1180_v22 = vpop.eup %1179 }
 0x799   :  { %v540_v24 = vmul.f32 %v1180_v22, %v524_v8 }
 0x79a   :  { %v1182_v25 = vpop.eup %1181 }
 0x79b   :  { %v546_v26 = vmul.f32 %v991_v23, %v540_v24  ;;  %v541_v27 = vmul.f32 %v1182_v25, %v525_v10 }
 0x79d   :  { %v547_v29 = vmul.f32 %v991_v23, %v541_v27  ;;  %v1345_v30 = vadd.f32 %v992_v28, %v546_v26 }
 0x79f   :  { %v1347_v33 = vadd.f32 %v992_v28, %v547_v29  ;;  %v1155_v28 = vld [vmem:[%s1426_s2 + $0x14] ss:$28 sps:$4 sm:$0xff]  }
 0x7a1   :  { %v554_v34 = vpack.c.bf16 %v1347_v33, %v1345_v30 }
 0x7a3   :  { %1097 = vmatmul.mubr.msk.bf16.vlgmr.msra.gmra.mrb[12].mxu1 %vm60_vm0, %v554_v34 }
 0x7a4   :  { %1112 = vmatprep.mubr.msk.bf16.mxu1 %vm1194_vm1, %v1193_v14  ;;  %1109 = vmatpush3.bf16.msra.mxu1 %v1151_v35 }
 0x7a5   :  { %1110 = vmatprep.subr.bf16.mxu1 %v1193_v14 }
 0x7a8   :  { %1111 = vmatpush3.bf16.msra.mxu1 %v1152_v36  ;;  %v795_v36 = vlaneseq }
 0x7a9   :  { %1122 = vmatprep.subr.bf16.mxu1 %v1193_v14 }
 0x7aa   :  { %v796_v38 = vshrl.u32 %v795_v36, 7 }
 0x7ac   :  { %vm799_vm3 = vcmp.lt.s32.totalorder %v796_v38, 2 }
 0x876   :  { %v608_v40 = vpop.f32.mrb[12].mxu1 }
 0x877   :  { %v609_v41 = vadd.f32 %v993_v39, %v608_v40  ;;  %v1098_v42 = vpop.f32.mrb[13].mxu1 }
 0x878   :  { %v611_v43 = vpop.f32.mrb[14].mxu1  ;;  %v1004_v42 = vld [vmem:[%s1427_s3 + $0xa] ss:$0 sm:$0xff] }
 0x879   :  { %v617_v44 = vmul.f32 0.044715, %v609_v41  ;;  %v612_v45 = vadd.f32 %v993_v39, %v611_v43  ;;  %v1099_v46 = vpop.f32.mrb[15].mxu1  ;;  %v615_v59 = vmul.f32 0.5, %v609_v41  ;;  %v800_v39 = vmul.u32 8, %v796_v38 }
 0x87a   :  { %v798_v43 = vand.u32 127, %v795_v36 }
 0x87b   :  { %v619_v47 = vmul.f32 %v617_v44, %v609_v41  ;;  %v618_v48 = vmul.f32 0.044715, %v612_v45  ;;  %v616_v60 = vmul.f32 0.5, %v612_v45  ;;  %v801_v44 = vsel %vm799_vm3, %v800_v39, 0 }
 0x87c   :  { %vm802_vm4 = vcmp.eq.s32.totalorder %v798_v43, %v801_v44 }
 0x87d   :  { %v621_v49 = vmul.f32 %v619_v47, %v609_v41  ;;  %v620_v50 = vmul.f32 %v618_v48, %v612_v45  ;;  %v1005_v48 = vld [vmem:[%s1427_s3 + $0xb] ss:$0 sm:$0xff] }
 0x87f   :  { %v622_v51 = vmul.f32 %v620_v50, %v612_v45  ;;  %v623_v52 = vadd.f32 %v621_v49, %v609_v41 }
 0x881   :  { %v624_v53 = vadd.f32 %v622_v51, %v612_v45  ;;  %v625_v54 = vmul.f32 0.7978846, %v623_v52  ;;  %v1006_v52 = vsel %vm802_vm4, 1.0, %v1193_v14 }
 0x883   :  { %v626_v55 = vmul.f32 0.7978846, %v624_v53  ;;  %1183 = vtanh.f32 %v625_v54  ;;  %v805_v54 = vpack.c.bf16 %v1006_v52, %v1006_v52 }
 0x885   :  { %1185 = vtanh.f32 %v626_v55  ;;  %v1156_v55 = vld [vmem:[%s1426_s2 + $0x4c] ss:$28 sps:$4 sm:$0xff]  }
 0x88d   :  { %v1184_v56 = vpop.eup %1183 }
 0x88e   :  { %v629_v57 = vadd.f32 1.0, %v1184_v56 }
 0x88f   :  { %v1186_v58 = vpop.eup %1185 }
 0x890   :  { %v630_v61 = vadd.f32 1.0, %v1186_v58  ;;  %v631_v62 = vmul.f32 %v629_v57, %v615_v59 }
 0x892   :  { %v632_v63 = vmul.f32 %v630_v61, %v616_v60  ;;  %v1157_v61 = vld [vmem:[%s1426_s2 + $0x18] ss:$28 sps:$4 sm:$0xff]  }
 0x894   :  { %v633_v0 = vpack.c.bf16 %v632_v63, %v631_v62  ;;  %v1158_v62 = vld [vmem:[%s1426_s2 + $0x50] ss:$28 sps:$4 sm:$0xff]   ;;  %v1008_v63 = vld [vmem:[%s1427_s3 + $0x4] ss:$0 sm:$0xff] }
 0x896   :  { %635 = vrot.lane.b32.xlu1 %v633_v0, %s1196_s29  ;;  %1113 = vmatmul.mubr.msk.bf16.vlgmr.msra.gmra.mrb[16].mxu1 %vm60_vm0, %v633_v0 }
 0x897   :  { %1126 = vmatprep.mubr.msk.bf16.mxu1 %vm1194_vm1, %v1193_v14  ;;  %1123 = vmatpush3.bf16.msra.mxu1 %v1155_v28 }
 0x898   :  { %1124 = vmatprep.subr.bf16.mxu1 %v1193_v14 }
 0x89b   :  { %1125 = vmatpush3.bf16.msra.mxu1 %v1156_v55 }
 0x908   :  { %v636_v1 = vpop.permute.xlu1 %635 }
 0x909   :  { %1105 = vmatmul.mubr.msk.bf16.vlgmr.msra.gmra.mrb[16].mxu0 %vm60_vm0, %v636_v1 }
 0x90a   :  { %1118 = vmatprep.mubr.msk.bf16.mxu0 %vm1194_vm1, %v1193_v14 }
 0x969   :  { %v742_v2 = vpop.f32.mrb[16].mxu1 }
 0x96a   :  { %v1114_v3 = vpop.f32.mrb[17].mxu1 }
 0x96b   :  { %v745_v4 = vpop.f32.mrb[18].mxu1 }
 0x96c   :  { %v1115_v5 = vpop.f32.mrb[19].mxu1 }
 0x9dc   :  { %v686_v7 = vpop.f32.mrb[16].mxu0 }
 0x9dd   :  { %v743_v8 = vadd.f32 %v742_v2, %v686_v7  ;;  %v1106_v9 = vpop.f32.mrb[17].mxu0 }
 0x9de   :  { %v689_v10 = vpop.f32.mrb[18].mxu0 }
 0x9df   :  { %v753_v11 = vadd.f32 %v1003_v6, %v743_v8  ;;  %v746_v12 = vadd.f32 %v745_v4, %v689_v10  ;;  %v1107_v13 = vpop.f32.mrb[19].mxu0 }
 0x9e1   :  { %v754_v31 = vadd.f32 %v1003_v6, %v746_v12  ;;  %v755_v32 = vadd.f32 %v753_v11, %v1345_v30 }
 0x9e3   :  { %v757_v15 = vsel %vm60_vm0, %v755_v32, 0.0  ;;  %v756_v16 = vadd.f32 %v754_v31, %v1347_v33 }
 0x9e4   :  { %758 = vadd.xlane.f32.xlu0 %v757_v15 }
 0x9e5   :  { %v760_v17 = vsel %vm60_vm0, %v756_v16, 0.0 }
 0x9e8   :  { %761 = vadd.xlane.f32.xlu0 %v760_v17 }
 0xa71   :  { %v759_v18 = vpop.xlane.xlu0 %758 }
 0xa72   :  { %v763_v19 = vmul.f32 0.03125, %v759_v18 }
 0xa74   :  { %v765_v20 = vsub.f32 %v755_v32, %v763_v19 }
 0xa75   :  { %v762_v21 = vpop.xlane.xlu0 %761 }
 0xa76   :  { %v764_v22 = vmul.f32 0.03125, %v762_v21  ;;  %v767_v23 = vmul.f32 %v765_v20, %v765_v20 }
 0xa78   :  { %v766_v24 = vsub.f32 %v756_v16, %v764_v22  ;;  %v769_v25 = vsel %vm60_vm0, %v767_v23, 0.0 }
 0xa79   :  { %770 = vadd.xlane.f32.xlu0 %v769_v25 }
 0xa7a   :  { %v768_v26 = vmul.f32 %v766_v24, %v766_v24 }
 0xa7c   :  { %v772_v27 = vsel %vm60_vm0, %v768_v26, 0.0 }
 0xa7d   :  { %773 = vadd.xlane.f32.xlu0 %v772_v27 }
 0xb06   :  { %v771_v29 = vpop.xlane.xlu0 %770 }
 0xb07   :  { %v775_v30 = vmul.f32 0.03125, %v771_v29 }
 0xb09   :  { %v777_v33 = vadd.f32 1e-12, %v775_v30 }
 0xb0a   :  { %v774_v34 = vpop.xlane.xlu0 %773 }
 0xb0b   :  { %1187 = vrsqrt.f32 %v777_v33  ;;  %v776_v35 = vmul.f32 0.03125, %v774_v34 }
 0xb0d   :  { %v778_v37 = vadd.f32 1e-12, %v776_v35 }
 0xb0f   :  { %1189 = vrsqrt.f32 %v778_v37 }
 0xb15   :  { %v1188_v40 = vpop.eup %1187 }
 0xb16   :  { %v781_v41 = vmul.f32 %v1188_v40, %v765_v20 }
 0xb18   :  { %v787_v47 = vmul.f32 %v1004_v42, %v781_v41 }
 0xb19   :  { %v1190_v45 = vpop.eup %1189 }
 0xb1a   :  { %v782_v46 = vmul.f32 %v1190_v45, %v766_v24  ;;  %v793_v50 = vadd.f32 %v1005_v48, %v787_v47 }
 0xb1c   :  { %v788_v49 = vmul.f32 %v1004_v42, %v782_v46 }
 0xb1e   :  { %v794_v51 = vadd.f32 %v1005_v48, %v788_v49 }
 0xb20   :  { %v806_v53 = vpack.c.bf16 %v794_v51, %v793_v50 }
 0xb22   :  { %1117 = vmatpush3.bf16.msra.mxu0 %v806_v53 }
 0xb23   :  { %1130 = vmatprep.subr.bf16.mxu0 %v1193_v14 }
 0xb25   :  { %1119 = vmatmul.mubr.msk.bf16.vlgmr.msra.gmra.mrb[20].mxu0 %vm167_vm2, %v805_v54 }
 0xb26   :  { %1134 = vmatprep.mubr.msk.bf16.mxu0 %vm1194_vm1, %v1193_v14  ;;  %1131 = vmatpush3.bf16.msra.mxu0 %v1157_v61 }
 0xb27   :  { %1132 = vmatprep.subr.bf16.mxu0 %v1193_v14  ;;  %v1012_v14 = vld [vmem:[%s1427_s3 + $0x5] ss:$0 sm:$0xff] }
 0xb2a   :  { %1133 = vmatpush3.bf16.msra.mxu0 %v1158_v62 }
 0xbf8   :  { %v844_v56 = vpop.f32.mrb[20].mxu0 }
 0xbf9   :  { %v850_v57 = vpack.c.bf16 %v844_v56, %v844_v56  ;;  %v1120_v58 = vpop.f32.mrb[21].mxu0 }
 0xbfa   :  { %v847_v59 = vpop.f32.mrb[22].mxu0 }
 0xbfb   :  { %v1121_v60 = vpop.f32.mrb[23].mxu0  ;;  %1127 = vmatmul.mubr.msk.bf16.vlgmr.msra.gmra.mrb[20].mxu1 %vm60_vm0, %v850_v57 }
 0xcce   :  { %v904_v0 = vpop.f32.mrb[20].mxu1 }
 0xccf   :  { %v905_v1 = vadd.f32 %v1008_v63, %v904_v0  ;;  %v1128_v2 = vpop.f32.mrb[21].mxu1 }
 0xcd0   :  { %v907_v3 = vpop.f32.mrb[22].mxu1 }
 0xcd1   :  { %1191 = vtanh.f32 %v905_v1  ;;  %v1129_v4 = vpop.f32.mrb[23].mxu1 }
 0xcdb   :  { %v1192_v5 = vpop.eup %1191 }
 0xcdc   :  { %v911_v6 = vpack.c.bf16 %v1192_v5, %v1192_v5 }
 0xcde   :  { %1135 = vmatmul.mubr.msk.bf16.vlgmr.msra.gmra.mrb[24].mxu0 %vm60_vm0, %v911_v6 }
 0xdb1   :  { %v965_v7 = vpop.f32.mrb[24].mxu0 }
 0xdb2   :  { %v966_v8 = vadd.f32 %v1012_v14, %v965_v7  ;;  %v1136_v9 = vpop.f32.mrb[25].mxu0 }
 0xdb3   :  { %v968_v10 = vpop.f32.mrb[26].mxu0 }
 0xdb4   :  { %971 = vst [vmem:[%s1429_s4] sm:$0xff] %v966_v8  ;;  %v1137_v11 = vpop.f32.mrb[27].mxu0 }

</bundles_post_ra>
